<compile_context>
chip_gen: v6e
topology: v6e:2x2x1
jax: 0.10.0
libtpu: 0.0.40
codegen_flags: <defaults>
</compile_context>

<pallas_src>
import jax
import jax.numpy as jnp
from jax.experimental import pallas as pl
from jax.experimental.pallas import tpu as pltpu


_LANES = 128
_SUBLANES = 8


def _row_multiple(itemsize):
    # Sublane packing: 32-bit -> 8 rows/vreg, 16-bit -> 16, 8-bit -> 32.
    return _SUBLANES * max(1, 4 // max(1, itemsize))


def _choose_tile_n(n, c, itemsize):
    """Row-tile size from a VMEM byte budget.

    Budget uses the lane-padded class dim (C rounded up to 128) and includes
    the lane-padded (tile_n, 1) int32 target column, both double-buffered.
    The pred buffer itself is capped at ~4 MiB (past the measured ~85%
    HBM-roofline knee) so elementwise/reduce intermediates stay comfortably
    inside the scoped-VMEM limit on v7x as well.
    """
    c_pad = ((c + _LANES - 1) // _LANES) * _LANES
    pred_row_bytes = c_pad * itemsize
    tgt_row_bytes = _LANES * 4                  # (tile_n,1) int32 pads to 128 lanes

    per_pred_buf_budget = 4 * 1024 * 1024       # ~knee of HBM efficiency curve
    total_stream_budget = 16 * 1024 * 1024      # 2x pred + 2x target in flight

    by_pred = per_pred_buf_budget // pred_row_bytes
    by_total = total_stream_budget // (2 * (pred_row_bytes + tgt_row_bytes))
    tile = max(1, min(by_pred, by_total))

    mult = _row_multiple(itemsize)
    tile = max(mult, (tile // mult) * mult)
    n_pad = ((n + mult - 1) // mult) * mult
    return min(tile, n_pad)


def _make_accuracy_kernel(n_rows, tile_n, topk_t, pred_dtype):
    if jnp.issubdtype(jnp.dtype(pred_dtype), jnp.floating):
        lowest = float(jnp.finfo(pred_dtype).min)
    else:
        lowest = int(jnp.iinfo(pred_dtype).min)

    def kernel(pred_ref, tgt_ref, out_ref):
        i = pl.program_id(0)
        pred = pred_ref[...]                       # (tile_n, C), input dtype
        tgt = tgt_ref[...]                         # (tile_n, 1) int32
        tn, c = pred.shape

        # Target logit via one-hot select + row max (no dynamic gather on TPU).
        col_ids = jax.lax.broadcasted_iota(jnp.int32, (tn, c), 1)
        tgt_score = jnp.max(jnp.where(col_ids == tgt, pred, lowest),
                            axis=1, keepdims=True)                 # (tile_n, 1)

        # rank = number of logits strictly greater than the target logit.
        rank = jnp.sum((pred > tgt_score).astype(jnp.int32),
                       axis=1, keepdims=True)                      # (tile_n, 1) i32

        # Padded rows of the last partial tile: give them a huge rank so they
        # never count as correct (replaces an explicit per-k validity AND).
        row_ids = jax.lax.broadcasted_iota(jnp.int32, (tn, 1), 0) + i * tile_n
        rank = jnp.where(row_ids < n_rows, rank, jnp.int32(2 ** 30))

        # Per-k correct counts (int32, exact), packed into lanes 0..K-1 of a
        # (1, 128) row.  k values are static Python ints -> no captured consts,
        # no extra kvec input stream.
        lane_ids = jax.lax.broadcasted_iota(jnp.int32, (1, _LANES), 1)
        row = jnp.zeros((1, _LANES), jnp.int32)
        for j, k in enumerate(topk_t):
            cnt = jnp.sum((rank < k).astype(jnp.int32),
                          axis=0, keepdims=True)                   # (1, 1)
            row = jnp.where(lane_ids == j, cnt, row)

        # Per-tile partial-count block (independent per grid step -> the grid
        # axis can be "parallel" and shard across TensorCores).
        out_ref[...] = jnp.broadcast_to(row.reshape(1, 1, _LANES),
                                        (1, _SUBLANES, _LANES))

    return kernel


def accuracy_pallas(pred, target, topk=1, tile_n=None):
    """Pallas implementation of mmdet `accuracy`.

    Tie behavior: on exact float ties the target class counts as ranked above
    equal non-target logits (may differ from torch.topk index-order ties).
    """
    assert isinstance(topk, (int, tuple))
    if isinstance(topk, int):
        topk_t, return_single = (int(topk),), True
    else:
        topk_t, return_single = tuple(int(k) for k in topk), False

    num_k = len(topk_t)
    assert num_k <= _LANES
    n, c = pred.shape

    if n == 0:  # guard: avoid 100/0
        zeros = [jnp.zeros((1,), jnp.float32) for _ in range(num_k)]
        return zeros[0] if return_single else zeros

    itemsize = jnp.dtype(pred.dtype).itemsize
    if tile_n is None:
        tile_n = _choose_tile_n(n, c, itemsize)
    mult = _row_multiple(itemsize)
    tile_n = max(mult, (int(tile_n) // mult) * mult)
    num_tiles = pl.cdiv(n, tile_n)

    tgt2d = target.astype(jnp.int32).reshape(n, 1)

    kernel = _make_accuracy_kernel(n, tile_n, topk_t, pred.dtype)

    cost = pl.CostEstimate(
        flops=6 * n * c,
        transcendentals=0,
        bytes_accessed=(n * c * itemsize + n * 4
                        + num_tiles * _SUBLANES * _LANES * 4),
    )

    partials = pl.pallas_call(
        kernel,
        out_shape=jax.ShapeDtypeStruct((num_tiles, _SUBLANES, _LANES), jnp.int32),
        grid=(num_tiles,),
        in_specs=[
            pl.BlockSpec((tile_n, c), lambda i: (i, 0)),   # pred row tile
            pl.BlockSpec((tile_n, 1), lambda i: (i, 0)),   # target column tile
            # TODO(synk): sweep pipeline_mode=pl.Buffered(3) on the pred spec
            # for v7x if profiles show exposed DMA at this tile size.
        ],
        out_specs=pl.BlockSpec((1, _SUBLANES, _LANES), lambda i: (i, 0, 0)),
        compiler_params=pltpu.CompilerParams(
            dimension_semantics=("parallel",),
            vmem_limit_bytes=48 * 1024 * 1024,
        ),
        cost_estimate=cost,
    )(pred, tgt2d)

    # Tiny epilogue: exact int32 sum of per-tile counts, then scale.
    counts = jnp.sum(partials[:, 0, :num_k], axis=0)          # (K,) int32
    acc = counts.astype(jnp.float32) * jnp.float32(100.0 / n)
    res = [acc[j:j + 1] for j in range(num_k)]                # each shape (1,)
    return res[0] if return_single else res


class Accuracy:
    """JAX/Pallas port of mmdet.models.losses.accuracy.Accuracy."""

    def __init__(self, topk=(1,)):
        self.topk = topk

    def __call__(self, pred, target):
        return accuracy_pallas(pred, target, self.topk)


def _accuracy_ref(pred, target, topk):
    """Pure-JAX reference using lax.top_k (mirrors the torch code)."""
    maxk = max(topk)
    _, pred_label = jax.lax.top_k(pred, maxk)               # (N, maxk)
    pred_label = pred_label.T                                # (maxk, N)
    correct = pred_label == target.reshape(1, -1)            # (maxk, N)
    res = []
    for k in topk:
        correct_k = jnp.sum(correct[:k].astype(jnp.float32)).reshape(1)
        res.append(correct_k * (100.0 / pred.shape[0]))
    return res


if __name__ == "__main__":
    key = jax.random.PRNGKey(0)
    k_pred, k_tgt = jax.random.split(key)

    N, C = 16, 8
    pred = jax.random.normal(k_pred, (N, C), dtype=jnp.float32)
    target = jax.random.randint(k_tgt, (N,), 0, C, dtype=jnp.int32)

    topk = (1, 5)
    ref = _accuracy_ref(pred, target, topk)

    # Default tile (single grid step).
    res = Accuracy(topk=topk)(pred, target)
    res = [jax.block_until_ready(r) for r in res]
    for r, rr in zip(res, ref):
        assert r.shape == (1,)
        assert jnp.allclose(r, rr, atol=1e-5), (r, rr)

    # Forced small tile -> multiple grid steps, exercises the per-tile
    # partial-count ("parallel") path.
    res_t = accuracy_pallas(pred, target, topk, tile_n=8)
    res_t = [jax.block_until_ready(r) for r in res_t]
    for r, rr in zip(res_t, ref):
        assert jnp.allclose(r, rr, atol=1e-5), (r, rr)

    # Ragged batch -> last tile is partially padded and must be masked out.
    N2 = 13
    pred2, target2 = pred[:N2], target[:N2]
    ref2 = _accuracy_ref(pred2, target2, topk)
    res2 = accuracy_pallas(pred2, target2, topk, tile_n=8)
    res2 = [jax.block_until_ready(r) for r in res2]
    for r, rr in zip(res2, ref2):
        assert jnp.allclose(r, rr, atol=1e-5), (r, rr)

    # int topk path (return_single=True).
    r1 = jax.block_until_ready(accuracy_pallas(pred, target, 1))
    assert r1.shape == (1,)
    assert jnp.allclose(r1, ref[0], atol=1e-5)

    # bf16 pred path (input-dtype streaming, 16-row sublane packing).
    pred_bf = pred.astype(jnp.bfloat16)
    ref_bf = _accuracy_ref(pred_bf.astype(jnp.float32), target, topk)
    res_bf = accuracy_pallas(pred_bf, target, topk)
    res_bf = [jax.block_until_ready(r) for r in res_bf]
    for r, rr in zip(res_bf, ref_bf):
        assert jnp.allclose(r, rr, atol=1e-5), (r, rr)

    print("KERNEL_OK")
</pallas_src>

<mosaic_0001>
module attributes {stable_mosaic.version = 11 : i64} {
  func.func @kernel(%arg0: i32, %arg1: memref<16x8xf32, #tpu.memory_space<vmem>>, %arg2: memref<16x1xi32, #tpu.memory_space<vmem>>, %arg3: memref<1x8x128xi32, #tpu.memory_space<vmem>>) attributes {dimension_semantics = [#tpu.dimension_semantics<parallel>], iteration_bounds = array<i64: 1>, scalar_prefetch = 0 : i64, scratch_operands = 0 : i64, tpu.core_type = #tpu.core_type<tc>, window_params = [{transform_indices = @transform_0, window_bounds = array<i64: 16, 8>}, {transform_indices = @transform_1, window_bounds = array<i64: 16, 1>}, {transform_indices = @transform_2, window_bounds = array<i64: 1, 8, 128>}]} {
    %c0 = arith.constant 0 : index
    %c0_0 = arith.constant 0 : index
    %0 = vector.load %arg1[%c0, %c0_0] : memref<16x8xf32, #tpu.memory_space<vmem>>, vector<16x8xf32>
    %c0_1 = arith.constant 0 : index
    %c0_2 = arith.constant 0 : index
    %1 = vector.load %arg2[%c0_1, %c0_2] : memref<16x1xi32, #tpu.memory_space<vmem>>, vector<16x1xi32>
    %2 = tpu.iota {dimensions = array<i32: 1>} : vector<16x8xi32>
    %3 = vector.broadcast %1 : vector<16x1xi32> to vector<16x8xi32>
    %4 = arith.cmpi eq, %2, %3 : vector<16x8xi32>
    %cst = arith.constant -3.40282347E+38 : f32
    %5 = vector.broadcast %cst : f32 to vector<16x8xf32>
    %6 = arith.select %4, %0, %5 : vector<16x8xi1>, vector<16x8xf32>
    %cst_3 = arith.constant dense<0xFF800000> : vector<16xf32>
    %7 = vector.multi_reduction <maximumf>, %6, %cst_3 [1] : vector<16x8xf32> to vector<16xf32>
    %8 = vector.shape_cast %7 : vector<16xf32> to vector<16x1xf32>
    %9 = vector.broadcast %8 : vector<16x1xf32> to vector<16x8xf32>
    %10 = arith.cmpf ogt, %0, %9 : vector<16x8xf32>
    %11 = arith.extui %10 : vector<16x8xi1> to vector<16x8xi32>
    %cst_4 = arith.constant dense<0> : vector<16xi32>
    %12 = vector.multi_reduction <add>, %11, %cst_4 [1] : vector<16x8xi32> to vector<16xi32>
    %13 = vector.shape_cast %12 : vector<16xi32> to vector<16x1xi32>
    %14 = tpu.iota {dimensions = array<i32: 0>} : vector<16x1xi32>
    %c16_i32 = arith.constant 16 : i32
    %15 = arith.muli %arg0, %c16_i32 : i32
    %16 = vector.broadcast %15 : i32 to vector<16x1xi32>
    %17 = arith.addi %14, %16 : vector<16x1xi32>
    %c16_i32_5 = arith.constant 16 : i32
    %18 = vector.broadcast %c16_i32_5 : i32 to vector<16x1xi32>
    %19 = arith.cmpi slt, %17, %18 : vector<16x1xi32>
    %c1073741824_i32 = arith.constant 1073741824 : i32
    %20 = vector.broadcast %c1073741824_i32 : i32 to vector<16x1xi32>
    %21 = arith.select %19, %13, %20 : vector<16x1xi1>, vector<16x1xi32>
    %22 = tpu.iota {dimensions = array<i32: 1>} : vector<1x128xi32>
    %c0_i32 = arith.constant 0 : i32
    %23 = vector.broadcast %c0_i32 : i32 to vector<1x128xi32>
    %c1_i32 = arith.constant 1 : i32
    %24 = vector.broadcast %c1_i32 : i32 to vector<16x1xi32>
    %25 = arith.cmpi slt, %21, %24 : vector<16x1xi32>
    %26 = arith.extui %25 : vector<16x1xi1> to vector<16x1xi32>
    %cst_6 = arith.constant dense<0> : vector<1xi32>
    %27 = vector.multi_reduction <add>, %26, %cst_6 [0] : vector<16x1xi32> to vector<1xi32>
    %28 = vector.shape_cast %27 : vector<1xi32> to vector<1x1xi32>
    %c0_i32_7 = arith.constant 0 : i32
    %29 = vector.broadcast %c0_i32_7 : i32 to vector<1x128xi32>
    %30 = arith.cmpi eq, %22, %29 : vector<1x128xi32>
    %31 = vector.shape_cast %28 : vector<1x1xi32> to vector<1x1xi32>
    %32 = vector.broadcast %31 : vector<1x1xi32> to vector<1x128xi32>
    %33 = arith.select %30, %32, %23 : vector<1x128xi1>, vector<1x128xi32>
    %c5_i32 = arith.constant 5 : i32
    %34 = vector.broadcast %c5_i32 : i32 to vector<16x1xi32>
    %35 = arith.cmpi slt, %21, %34 : vector<16x1xi32>
    %36 = arith.extui %35 : vector<16x1xi1> to vector<16x1xi32>
    %cst_8 = arith.constant dense<0> : vector<1xi32>
    %37 = vector.multi_reduction <add>, %36, %cst_8 [0] : vector<16x1xi32> to vector<1xi32>
    %38 = vector.shape_cast %37 : vector<1xi32> to vector<1x1xi32>
    %c1_i32_9 = arith.constant 1 : i32
    %39 = vector.broadcast %c1_i32_9 : i32 to vector<1x128xi32>
    %40 = arith.cmpi eq, %22, %39 : vector<1x128xi32>
    %41 = vector.shape_cast %38 : vector<1x1xi32> to vector<1x1xi32>
    %42 = vector.broadcast %41 : vector<1x1xi32> to vector<1x128xi32>
    %43 = arith.select %40, %42, %33 : vector<1x128xi1>, vector<1x128xi32>
    %44 = vector.shape_cast %43 : vector<1x128xi32> to vector<1x1x128xi32>
    %45 = vector.shape_cast %44 : vector<1x1x128xi32> to vector<1x1x128xi32>
    %46 = vector.broadcast %45 : vector<1x1x128xi32> to vector<1x8x128xi32>
    %c0_10 = arith.constant 0 : index
    %c0_11 = arith.constant 0 : index
    %c0_12 = arith.constant 0 : index
    %47 = vector.load %arg3[%c0_10, %c0_11, %c0_12] : memref<1x8x128xi32, #tpu.memory_space<vmem>>, vector<1x8x128xi32>
    tpu.vector_store %arg3[%c0_10, %c0_11, %c0_12], %46 {strides = array<i32>} : memref<1x8x128xi32, #tpu.memory_space<vmem>>, vector<1x8x128xi32>,
    return
  }
  func.func @transform_0(%arg0: i32) -> (i32, i32) {
    %c0_i32 = arith.constant 0 : i32
    %c0_i32_0 = arith.constant 0 : i32
    return %arg0, %c0_i32 : i32, i32
  }
  func.func @transform_1(%arg0: i32) -> (i32, i32) {
    %c0_i32 = arith.constant 0 : i32
    %c0_i32_0 = arith.constant 0 : i32
    return %arg0, %c0_i32 : i32, i32
  }
  func.func @transform_2(%arg0: i32) -> (i32, i32, i32) {
    %c0_i32 = arith.constant 0 : i32
    %c0_i32_0 = arith.constant 0 : i32
    %c0_i32_1 = arith.constant 0 : i32
    return %arg0, %c0_i32, %c0_i32_0 : i32, i32, i32
  }
}

</mosaic_0001>

<bundles_post_ra>
// kernel: tpu_custom_call.1
= control target key start
LH: loop header
LB: loop body
LE: loop exit
PB: predicated region body
PF: predicated region fallthrough
CT: control target
= control target key end

     0   :  { %v142_v1 = vmov 0   ;;  %s184_s0 = inlined_call_operand.vmem [shape: f32[16,8], index: 0, kind: input, shape index: {}]   ;;  %s185_s1 = inlined_call_operand.vmem [shape: s32[16,1], index: 1, kind: input, shape index: {}]   ;;  %s186_s2 = inlined_call_operand.hbm [shape: s32[1,8,128], index: 2, kind: output, shape index: {}]  }
   0x1   :  { %v14_v0 = vld [vmem:[%s185_s1] sm:$0xff]  ;;  %119 = vset.pattern.permute.xlu0 %v142_v1 }
   0x2   :  { %7 = vsyncpa [#allocation3], 0  ;;  %19 = vperm.xlu0 %119, %v14_v0   ;;  %v15_v2 = vld [vmem:[%s185_s1 + $0x8] sm:$0xff]  ;;  %v16_v3 = vlaneseq  ;;  %v12_v5 = vld [vmem:[%s184_s0] sm:$0xff]  ;;  %vm28_vm0 = vcmask 64512  }
   0x3   :  { %v13_v9 = vld [vmem:[%s184_s0 + $0x8] sm:$0xff]  ;;  %s143_s0 = smov [#allocation2]  }
   0x4   :  { %v165_v4 = vand.u32 127, %v16_v3  ;;  %s109_s1 = sshll.u32 %s143_s0, 4  ;;  %s110_s1 = int_to_ptr.vmem [resolvable:$true] %s109_s1 }
   0x5   :  { %s120_s17 = scalar_lea.vmem %s110_s1, 128  ;;  %p125_p1 = scmp.lt.s32.totalorder %s110_s1, %s110_s1 }
   0x6   :  { %22 = vperm.xlu0 %119, %v15_v2   ;;  %vm87_vm9 = vcmp.eq.s32.totalorder %v165_v4, 0  ;;  %vm100_vm10 = vcmp.eq.s32.totalorder %v165_v4, 1  ;;  %p121_p0 = scmp.ne.s32.totalorder %s110_s1, %s120_s17  ;;  %p126_p2 = scmp.lt.s32.totalorder %s120_s17, %s120_s17 }
   0x8   :  { %p127_p3 = por %p126_p2, %p125_p1 }
   0xa   :  { %p128_p4 = pnand %p127_p3, %p121_p0 }
  0x7d   :  { %v20_v6 = vpop.permute.xlu0 %19 }
  0x7e   :  { %vm24_vm1 = vcmp.eq.s32.totalorder %v165_v4, %v20_v6 }
  0x7f   :  { %v26_v7 = vsel %vm24_vm1, %v12_v5, -3.4028235e+38 }
  0x80   :  { %v29_v8 = vsel %vm28_vm0, %v26_v7, -inf }
  0x81   :  { %v23_v10 = vpop.permute.xlu0 %22  ;;  %30 = vmax.xlane.f32.xlu1 %v29_v8 }
  0x82   :  { %vm25_vm2 = vcmp.eq.s32.totalorder %v165_v4, %v23_v10 }
  0x83   :  { %v27_v11 = vsel %vm25_vm2, %v13_v9, -3.4028235e+38 }
  0x84   :  { %v32_v12 = vsel %vm28_vm0, %v27_v11, -inf }
  0x85   :  { %33 = vmax.xlane.f32.xlu1 %v32_v12 }
 0x10a   :  { %v31_v13 = vpop.xlane.xlu1 %30 }
 0x10b   :  { %vm35_vm3 = vcmp.gt.f32.partialorder %v12_v5, %v31_v13 }
 0x10c   :  { %v37_v14 = vsel %vm35_vm3, 1, %v142_v1 }
 0x10d   :  { %v39_v15 = vsel %vm28_vm0, %v37_v14, 0 }
 0x10e   :  { %v34_v16 = vpop.xlane.xlu1 %33  ;;  %v41_v17 = vshrl.u32 %v39_v15, 16  ;;  %v40_v23 = vand.u32 65535, %v39_v15 }
 0x10f   :  { %vm36_vm4 = vcmp.gt.f32.partialorder %v13_v9, %v34_v16 }
 0x110   :  { %v38_v18 = vsel %vm36_vm4, 1, %v142_v1  ;;  %v43_v19 = vcvt.s32.f32 %v41_v17  ;;  %v42_v24 = vcvt.s32.f32 %v40_v23 }
 0x111   :  { %v52_v20 = vsel %vm28_vm0, %v38_v18, 0 }
 0x112   :  { %46 = vadd.xlane.f32.xlu0 %v43_v19  ;;  %v54_v21 = vshrl.u32 %v52_v20, 16  ;;  %v53_v25 = vand.u32 65535, %v52_v20 }
 0x114   :  { %v56_v22 = vcvt.s32.f32 %v54_v21  ;;  %v55_v26 = vcvt.s32.f32 %v53_v25 }
 0x116   :  { %59 = vadd.xlane.f32.xlu1 %v56_v22 }
 0x11a   :  { %44 = vadd.xlane.f32.xlu1 %v42_v24 }
 0x11e   :  { %57 = vadd.xlane.f32.xlu1 %v55_v26 }
 0x19b   :  { %v47_v27 = vpop.xlane.xlu0 %46 }
 0x19c   :  { %v49_v29 = vcvt.f32.s32 %v47_v27 }
 0x19e   :  { %v50_v31 = vshll.u32 %v49_v29, 16 }
 0x19f   :  { %v60_v28 = vpop.xlane.xlu1 %59 }
 0x1a0   :  { %v62_v32 = vcvt.f32.s32 %v60_v28 }
 0x1a2   :  { %v63_v36 = vshll.u32 %v62_v32, 16 }
 0x1a3   :  { %v45_v30 = vpop.xlane.xlu1 %44 }
 0x1a4   :  { %v48_v33 = vcvt.f32.s32 %v45_v30 }
 0x1a6   :  { %v51_v34 = vadd.s32 %v50_v31, %v48_v33 }
 0x1a7   :  { %v58_v35 = vpop.xlane.xlu1 %57 }
 0x1a8   :  { %v61_v37 = vcvt.f32.s32 %v58_v35  ;;  %vm76_vm5 = vcmp.lt.s32.totalorder %v51_v34, 1  ;;  %vm89_vm6 = vcmp.lt.s32.totalorder %v51_v34, 5 }
 0x1a9   :  { %v78_v39 = vsel %vm76_vm5, 1, %v142_v1  ;;  %v91_v40 = vsel %vm89_vm6, 1, %v142_v1 }
 0x1aa   :  { %v64_v38 = vadd.s32 %v63_v36, %v61_v37 }
 0x1ac   :  { %vm77_vm7 = vcmp.lt.s32.totalorder %v64_v38, 1  ;;  %vm90_vm8 = vcmp.lt.s32.totalorder %v64_v38, 5 }
 0x1ad   :  { %v79_v41 = vsel %vm77_vm7, 1, %v142_v1  ;;  %v92_v42 = vsel %vm90_vm8, 1, %v142_v1 }
 0x1ae   :  { %v80_v43 = vadd.s32 %v79_v41, %v78_v39  ;;  %v93_v44 = vadd.s32 %v92_v42, %v91_v40 }
 0x1b0   :  { %v81_v45 = vrot.slane %v80_v43, 4  ;;  %v94_v46 = vrot.slane %v93_v44, 4 }
 0x1b2   :  { %v82_v47 = vadd.s32 %v81_v45, %v80_v43  ;;  %v95_v48 = vadd.s32 %v94_v46, %v93_v44 }
 0x1b4   :  { %v83_v49 = vrot.slane %v82_v47, 2  ;;  %v96_v50 = vrot.slane %v95_v48, 2 }
 0x1b6   :  { %v84_v51 = vadd.s32 %v83_v49, %v82_v47  ;;  %v97_v52 = vadd.s32 %v96_v50, %v95_v48 }
 0x1b8   :  { %v85_v53 = vrot.slane %v84_v51, 1  ;;  %v98_v54 = vrot.slane %v97_v52, 1 }
 0x1ba   :  { %v86_v55 = vadd.s32 %v85_v53, %v84_v51  ;;  %v99_v56 = vadd.s32 %v98_v54, %v97_v52 }
 0x1bc   :  { %v88_v57 = vsel %vm87_vm9, %v86_v55, 0 }
 0x1bd   :  { %v101_v58 = vsel %vm100_vm10, %v99_v56, %v88_v57 }
 0x1be   :  { %102 = vst [vmem:[#allocation2] sm:$0xff] %v101_v58 }
 0x1bf   :  { %131 = shalt.err (!%p128_p4)
}
 0x1c0   :  { %112 = dma.vmem_to_hbm [thread:$0]  %s110_s1, 128, %s186_s2, [#allocation3]  }
 0x1c1   :  { %140 = dma.done.wait [#allocation3], 128  }
 0x1c2   :  { %141 = vsyncadd [#allocation3], 4294967168 }
 0x1c3   :  { %116 = vsyncpa [#allocation3], 1 }

</bundles_post_ra>
